<compile_context>
chip_gen: v7x
topology: tpu7x:2x2x1
jax: 0.10.0
libtpu: 0.0.40
codegen_flags: <defaults>
</compile_context>

<pallas_src>
import math
import functools

import jax
import jax.numpy as jnp
from jax.experimental import pallas as pl
from jax.experimental.pallas import tpu as pltpu

EPS = 1e-5


def _round_up(x, m):
    return ((x + m - 1) // m) * m


_VMEM_LIMIT_CACHE = None


def _vmem_limit_bytes():
    """Generation-aware scoped-VMEM budget: ~3/4 of physical VMEM."""
    global _VMEM_LIMIT_CACHE
    if _VMEM_LIMIT_CACHE is None:
        cap = 0
        try:
            cap = int(pltpu.get_tpu_info().vmem_capacity_bytes)
        except Exception:
            cap = 0
        if not cap:
            cap = 64 * 1024 * 1024            # conservative (v7x-sized) fallback
        _VMEM_LIMIT_CACHE = max(32 * 1024 * 1024, (cap * 3) // 4)
    return _VMEM_LIMIT_CACHE


def _mosaic_params(*semantics):
    return pltpu.CompilerParams(dimension_semantics=tuple(semantics),
                                vmem_limit_bytes=_vmem_limit_bytes())


def _tile_rows(n, row_bytes, target_bytes=2 * 1024 * 1024, cap=8192):
    """Byte-targeted row tile (multiple of 8): ~target_bytes per block."""
    rows = max(8, min(cap, (target_bytes // max(row_bytes, 1)) // 8 * 8))
    return min(rows, _round_up(n, 8))


# --------------------------------------------------------------------------
# Kernel 1: streaming BatchNorm statistics -> fused scale/shift (bn1 only)
# --------------------------------------------------------------------------
def bn_stats_kernel(x_ref, gamma_ref, beta_ref, scale_ref, shift_ref,
                    sum_sc, sq_sc, *, n_valid):
    i = pl.program_id(0)

    @pl.when(i == 0)
    def _():
        sum_sc[...] = jnp.zeros_like(sum_sc)
        sq_sc[...] = jnp.zeros_like(sq_sc)

    x = x_ref[...]
    tm = x.shape[0]
    row = jax.lax.broadcasted_iota(jnp.int32, x.shape, 0) + i * tm
    x = jnp.where(row < n_valid, x, 0.0)
    sum_sc[...] += jnp.sum(x, axis=0, keepdims=True)
    sq_sc[...] += jnp.sum(x * x, axis=0, keepdims=True)

    @pl.when(i == pl.num_programs(0) - 1)
    def _():
        inv_n = 1.0 / float(n_valid)
        mean = sum_sc[...] * inv_n
        var = jnp.maximum(sq_sc[...] * inv_n - mean * mean, 0.0)  # biased, like torch
        scale = gamma_ref[...] * jax.lax.rsqrt(var + EPS)
        scale_ref[...] = scale
        shift_ref[...] = beta_ref[...] - mean * scale


def bn_scale_shift(x_nc, gamma, beta):
    N, C = x_nc.shape
    tm = _tile_rows(N, 4 * C)
    kernel = functools.partial(bn_stats_kernel, n_valid=N)
    return pl.pallas_call(
        kernel,
        out_shape=(jax.ShapeDtypeStruct((1, C), jnp.float32),
                   jax.ShapeDtypeStruct((1, C), jnp.float32)),
        grid=(pl.cdiv(N, tm),),
        in_specs=[pl.BlockSpec((tm, C), lambda i: (i, 0)),
                  pl.BlockSpec((1, C), lambda i: (0, 0)),
                  pl.BlockSpec((1, C), lambda i: (0, 0))],
        out_specs=(pl.BlockSpec((1, C), lambda i: (0, 0)),
                   pl.BlockSpec((1, C), lambda i: (0, 0))),
        scratch_shapes=[pltpu.VMEM((1, C), jnp.float32),
                        pltpu.VMEM((1, C), jnp.float32)],
        compiler_params=_mosaic_params("arbitrary"),
    )(x_nc, gamma.reshape(1, C), beta.reshape(1, C))


# --------------------------------------------------------------------------
# Kernel 2: relu(bn1(x)) -> conv1/conv2/conv3, with x1-stats fused in epilogue
# --------------------------------------------------------------------------
def make_bn_relu_split3_kernel(n_valid):
    def kernel(x_ref, s_ref, h_ref, w1_ref, b1_ref, w2_ref, b2_ref, w3_ref, b3_ref,
               ga_ref, ba_ref,
               x1_ref, x2_ref, x3_ref, sca_ref, sha_ref, sum_sc, sq_sc):
        i = pl.program_id(0)

        @pl.when(i == 0)
        def _():
            sum_sc[...] = jnp.zeros_like(sum_sc)
            sq_sc[...] = jnp.zeros_like(sq_sc)

        a = jnp.maximum(x_ref[...] * s_ref[...] + h_ref[...], 0.0).astype(jnp.bfloat16)
        y1 = jnp.dot(a, w1_ref[...], preferred_element_type=jnp.float32) + b1_ref[...]
        y2 = jnp.dot(a, w2_ref[...], preferred_element_type=jnp.float32) + b2_ref[...]
        y3 = jnp.dot(a, w3_ref[...], preferred_element_type=jnp.float32) + b3_ref[...]
        x1_ref[...] = y1
        x2_ref[...] = y2
        x3_ref[...] = y3

        # fused batch statistics of x1 (consumed by conv_w's first BN, x1 part)
        tm = y1.shape[0]
        row = jax.lax.broadcasted_iota(jnp.int32, y1.shape, 0) + i * tm
        y1m = jnp.where(row < n_valid, y1, 0.0)
        sum_sc[...] += jnp.sum(y1m, axis=0, keepdims=True)
        sq_sc[...] += jnp.sum(y1m * y1m, axis=0, keepdims=True)

        @pl.when(i == pl.num_programs(0) - 1)
        def _():
            inv_n = 1.0 / float(n_valid)
            mean = sum_sc[...] * inv_n
            var = jnp.maximum(sq_sc[...] * inv_n - mean * mean, 0.0)
            sc = ga_ref[...] * jax.lax.rsqrt(var + EPS)
            sca_ref[...] = sc
            sha_ref[...] = ba_ref[...] - mean * sc
    return kernel


def bn_relu_split3(x_nc, scale, shift, w1, b1, w2, b2, w3, b3, ga1, ba1):
    N, Cin = x_nc.shape
    r = w1.shape[1]
    m = w3.shape[1]
    tm = _tile_rows(N, 4 * (Cin + 2 * r + m))
    kernel = make_bn_relu_split3_kernel(N)
    return pl.pallas_call(
        kernel,
        out_shape=(jax.ShapeDtypeStruct((N, r), jnp.float32),
                   jax.ShapeDtypeStruct((N, r), jnp.float32),
                   jax.ShapeDtypeStruct((N, m), jnp.float32),
                   jax.ShapeDtypeStruct((1, r), jnp.float32),
                   jax.ShapeDtypeStruct((1, r), jnp.float32)),
        grid=(pl.cdiv(N, tm),),
        in_specs=[pl.BlockSpec((tm, Cin), lambda i: (i, 0)),
                  pl.BlockSpec((1, Cin), lambda i: (0, 0)),
                  pl.BlockSpec((1, Cin), lambda i: (0, 0)),
                  pl.BlockSpec((Cin, r), lambda i: (0, 0)),
                  pl.BlockSpec((1, r), lambda i: (0, 0)),
                  pl.BlockSpec((Cin, r), lambda i: (0, 0)),
                  pl.BlockSpec((1, r), lambda i: (0, 0)),
                  pl.BlockSpec((Cin, m), lambda i: (0, 0)),
                  pl.BlockSpec((1, m), lambda i: (0, 0)),
                  pl.BlockSpec((1, r), lambda i: (0, 0)),
                  pl.BlockSpec((1, r), lambda i: (0, 0))],
        out_specs=(pl.BlockSpec((tm, r), lambda i: (i, 0)),
                   pl.BlockSpec((tm, r), lambda i: (i, 0)),
                   pl.BlockSpec((tm, m), lambda i: (i, 0)),
                   pl.BlockSpec((1, r), lambda i: (0, 0)),
                   pl.BlockSpec((1, r), lambda i: (0, 0))),
        scratch_shapes=[pltpu.VMEM((1, r), jnp.float32),
                        pltpu.VMEM((1, r), jnp.float32)],
        compiler_params=_mosaic_params("arbitrary"),
    )(x_nc, scale, shift, w1, b1.reshape(1, r), w2, b2.reshape(1, r),
      w3, b3.reshape(1, m), ga1.reshape(1, r), ba1.reshape(1, r))


# --------------------------------------------------------------------------
# Kernel 3: BN statistics of the (never materialized) unfolded x2, kpos-major
# --------------------------------------------------------------------------
def make_unfold_stats_kernel(H, W, k, n_valid):
    def kernel(x2p_ref, g_ref, b_ref, sc_ref, sh_ref, sum_sc, sq_sc):
        bi = pl.program_id(0)

        @pl.when(bi == 0)
        def _():
            sum_sc[...] = jnp.zeros_like(sum_sc)
            sq_sc[...] = jnp.zeros_like(sq_sc)

        sums, sqs = [], []
        for kh in range(k):
            for kw in range(k):
                xs = x2p_ref[0, kh:kh + H, kw:kw + W, :]
                xs = xs.reshape(H * W, xs.shape[-1])
                sums.append(jnp.sum(xs, axis=0, keepdims=True))
                sqs.append(jnp.sum(xs * xs, axis=0, keepdims=True))
        sum_sc[...] += jnp.concatenate(sums, axis=0)
        sq_sc[...] += jnp.concatenate(sqs, axis=0)

        @pl.when(bi == pl.num_programs(0) - 1)
        def _():
            inv_n = 1.0 / float(n_valid)
            mean = sum_sc[...] * inv_n
            var = jnp.maximum(sq_sc[...] * inv_n - mean * mean, 0.0)
            sc = g_ref[...] * jax.lax.rsqrt(var + EPS)
            sc_ref[...] = sc
            sh_ref[...] = b_ref[...] - mean * sc
    return kernel


def unfold_bn_stats(x2p, ga2, ba2, H, W, k):
    B, Hp, Wp, rel = x2p.shape
    kk = k * k
    kernel = make_unfold_stats_kernel(H, W, k, B * H * W)
    return pl.pallas_call(
        kernel,
        out_shape=(jax.ShapeDtypeStruct((kk, rel), jnp.float32),
                   jax.ShapeDtypeStruct((kk, rel), jnp.float32)),
        grid=(B,),
        in_specs=[pl.BlockSpec((1, Hp, Wp, rel), lambda b: (b, 0, 0, 0)),
                  pl.BlockSpec((kk, rel), lambda b: (0, 0)),
                  pl.BlockSpec((kk, rel), lambda b: (0, 0))],
        out_specs=(pl.BlockSpec((kk, rel), lambda b: (0, 0)),
                   pl.BlockSpec((kk, rel), lambda b: (0, 0))),
        scratch_shapes=[pltpu.VMEM((kk, rel), jnp.float32),
                        pltpu.VMEM((kk, rel), jnp.float32)],
        compiler_params=_mosaic_params("arbitrary"),
    )(x2p, ga2, ba2)


# --------------------------------------------------------------------------
# Kernel 4: conv_w stage 1 with in-kernel k*k unfold of x2 + fused h-stats
#   h = relu(BN(cat[x1, unfold(x2)])) @ Wc1   (x2u never hits HBM)
# --------------------------------------------------------------------------
def make_sam_w1_kernel(H, W, k, n_valid):
    def kernel(x1_ref, x2p_ref, s1_ref, h1_ref, s2_ref, h2_ref,
               wa_ref, wb_ref, gb_ref, bb_ref,
               h_ref, scb_ref, shb_ref, sum_sc, sq_sc):
        bi = pl.program_id(0)

        @pl.when(bi == 0)
        def _():
            sum_sc[...] = jnp.zeros_like(sum_sc)
            sq_sc[...] = jnp.zeros_like(sq_sc)

        a1 = jnp.maximum(x1_ref[...] * s1_ref[...] + h1_ref[...], 0.0)
        acc = jnp.dot(a1.astype(jnp.bfloat16), wa_ref[...],
                      preferred_element_type=jnp.float32)
        for kh in range(k):
            for kw in range(k):
                kpos = kh * k + kw
                xs = x2p_ref[0, kh:kh + H, kw:kw + W, :]
                xs = xs.reshape(H * W, xs.shape[-1])
                a2 = jnp.maximum(xs * s2_ref[kpos:kpos + 1, :]
                                 + h2_ref[kpos:kpos + 1, :], 0.0)
                acc = acc + jnp.dot(a2.astype(jnp.bfloat16), wb_ref[kpos],
                                    preferred_element_type=jnp.float32)
        h_ref[...] = acc

        # fused batch statistics of h (consumed by conv_w's second BN)
        sum_sc[...] += jnp.sum(acc, axis=0, keepdims=True)
        sq_sc[...] += jnp.sum(acc * acc, axis=0, keepdims=True)

        @pl.when(bi == pl.num_programs(0) - 1)
        def _():
            inv_n = 1.0 / float(n_valid)
            mean = sum_sc[...] * inv_n
            var = jnp.maximum(sq_sc[...] * inv_n - mean * mean, 0.0)
            sc = gb_ref[...] * jax.lax.rsqrt(var + EPS)
            scb_ref[...] = sc
            shb_ref[...] = bb_ref[...] - mean * sc
    return kernel


def sam_conv_w_stage1(x1_flat, x2p, s1, h1, s2, h2, wa, wb, gb, bb, H, W, k):
    B, Hp, Wp, rel = x2p.shape
    N = B * H * W
    G = wa.shape[1]
    kk = k * k
    kernel = make_sam_w1_kernel(H, W, k, N)
    return pl.pallas_call(
        kernel,
        out_shape=(jax.ShapeDtypeStruct((N, G), jnp.float32),
                   jax.ShapeDtypeStruct((1, G), jnp.float32),
                   jax.ShapeDtypeStruct((1, G), jnp.float32)),
        grid=(B,),
        in_specs=[pl.BlockSpec((H * W, rel), lambda b: (b, 0)),
                  pl.BlockSpec((1, Hp, Wp, rel), lambda b: (b, 0, 0, 0)),
                  pl.BlockSpec((1, rel), lambda b: (0, 0)),
                  pl.BlockSpec((1, rel), lambda b: (0, 0)),
                  pl.BlockSpec((kk, rel), lambda b: (0, 0)),
                  pl.BlockSpec((kk, rel), lambda b: (0, 0)),
                  pl.BlockSpec((rel, G), lambda b: (0, 0)),
                  pl.BlockSpec((kk, rel, G), lambda b: (0, 0, 0)),
                  pl.BlockSpec((1, G), lambda b: (0, 0)),
                  pl.BlockSpec((1, G), lambda b: (0, 0))],
        out_specs=(pl.BlockSpec((H * W, G), lambda b: (b, 0)),
                   pl.BlockSpec((1, G), lambda b: (0, 0)),
                   pl.BlockSpec((1, G), lambda b: (0, 0))),
        scratch_shapes=[pltpu.VMEM((1, G), jnp.float32),
                        pltpu.VMEM((1, G), jnp.float32)],
        compiler_params=_mosaic_params("arbitrary"),
    )(x1_flat, x2p, s1, h1, s2, h2, wa, wb, gb.reshape(1, G), bb.reshape(1, G))


# --------------------------------------------------------------------------
# Kernel 5: fused BN-scale/shift + ReLU + 1x1-conv matmul (+ optional residual)
# --------------------------------------------------------------------------
def fused_bn_relu_mm_kernel(x_ref, scale_ref, shift_ref, w_ref, b_ref, o_ref):
    a = jnp.maximum(x_ref[...] * scale_ref[...] + shift_ref[...], 0.0)
    y = jnp.dot(a.astype(jnp.bfloat16), w_ref[...], preferred_element_type=jnp.float32)
    o_ref[...] = y + b_ref[...]


def fused_bn_relu_mm_res_kernel(x_ref, scale_ref, shift_ref, w_ref, b_ref, r_ref, o_ref):
    a = jnp.maximum(x_ref[...] * scale_ref[...] + shift_ref[...], 0.0)
    y = jnp.dot(a.astype(jnp.bfloat16), w_ref[...], preferred_element_type=jnp.float32)
    o_ref[...] = y + b_ref[...] + r_ref[...]


def fused_matmul(x_nc, scale, shift, w_bf16, b, residual=None):
    N, Cin = x_nc.shape
    Cout = w_bf16.shape[1]
    row_bytes = 4 * (Cin + Cout + (Cout if residual is not None else 0))
    tm = _tile_rows(N, row_bytes)
    in_specs = [pl.BlockSpec((tm, Cin), lambda i: (i, 0)),
                pl.BlockSpec((1, Cin), lambda i: (0, 0)),
                pl.BlockSpec((1, Cin), lambda i: (0, 0)),
                pl.BlockSpec((Cin, Cout), lambda i: (0, 0)),
                pl.BlockSpec((1, Cout), lambda i: (0, 0))]
    args = [x_nc, scale, shift, w_bf16, b.reshape(1, Cout)]
    if residual is None:
        kernel = fused_bn_relu_mm_kernel
    else:
        kernel = fused_bn_relu_mm_res_kernel
        in_specs.append(pl.BlockSpec((tm, Cout), lambda i: (i, 0)))
        args.append(residual)
    return pl.pallas_call(
        kernel,
        out_shape=jax.ShapeDtypeStruct((N, Cout), jnp.float32),
        grid=(pl.cdiv(N, tm),),
        in_specs=in_specs,
        out_specs=pl.BlockSpec((tm, Cout), lambda i: (i, 0)),
        compiler_params=_mosaic_params("parallel"),
    )(*args)


# --------------------------------------------------------------------------
# Kernel 6: SAN local aggregation (in-kernel unfold of zero-padded x3, channel
# dim split as (share, G) so the share-broadcast is a sublane broadcast and the
# k*k tap shifts stay on leading dims), with fused bn2 batch statistics.
# --------------------------------------------------------------------------
def make_agg_kernel(H, W, k, share, G, n_total):
    def kernel(x3p_ref, w_ref, g2_ref, b2_ref,
               y_ref, scale2_ref, shift2_ref, sum_sc, sq_sc):
        b = pl.program_id(0)

        @pl.when(b == 0)
        def _():
            sum_sc[...] = jnp.zeros_like(sum_sc)
            sq_sc[...] = jnp.zeros_like(sq_sc)

        acc = jnp.zeros((H, W, share, G), jnp.float32)
        for kh in range(k):
            for kw in range(k):
                kpos = kh * k + kw
                wk = w_ref[0, :, :, kpos:kpos + 1, :]            # (H, W, 1, G)
                xs = x3p_ref[0, kh:kh + H, kw:kw + W, :, :]      # (H, W, share, G)
                acc = acc + xs * wk                              # group = c % G
        y_ref[0] = acc

        # fused bn2 statistics while y is still resident in VMEM
        sum_sc[...] += jnp.sum(jnp.sum(acc, axis=0), axis=0)
        sq_sc[...] += jnp.sum(jnp.sum(acc * acc, axis=0), axis=0)

        @pl.when(b == pl.num_programs(0) - 1)
        def _():
            inv_n = 1.0 / float(n_total)
            mean = sum_sc[...] * inv_n
            var = jnp.maximum(sq_sc[...] * inv_n - mean * mean, 0.0)
            sc = g2_ref[...] * jax.lax.rsqrt(var + EPS)
            scale2_ref[...] = sc
            shift2_ref[...] = b2_ref[...] - mean * sc
    return kernel


def sam_aggregate_bn2(x3_bhwc, w_bhwkg, gamma2, beta2, share, k):
    B, H, W, C = x3_bhwc.shape
    G = C // share
    kk = k * k
    p = k // 2
    Hp, Wp = H + 2 * p, W + 2 * p
    # TODO(synk): do the zero-pad halo in VMEM instead of this wrapper-side pad.
    x3p = jnp.pad(x3_bhwc, ((0, 0), (p, p), (p, p), (0, 0)))
    x3p = x3p.reshape(B, Hp, Wp, share, G)
    kernel = make_agg_kernel(H, W, k, share, G, B * H * W)
    y5, sc2, sh2 = pl.pallas_call(
        kernel,
        out_shape=(jax.ShapeDtypeStruct((B, H, W, share, G), jnp.float32),
                   jax.ShapeDtypeStruct((share, G), jnp.float32),
                   jax.ShapeDtypeStruct((share, G), jnp.float32)),
        grid=(B,),
        in_specs=[pl.BlockSpec((1, Hp, Wp, share, G), lambda b: (b, 0, 0, 0, 0)),
                  pl.BlockSpec((1, H, W, kk, G), lambda b: (b, 0, 0, 0, 0)),
                  pl.BlockSpec((share, G), lambda b: (0, 0)),
                  pl.BlockSpec((share, G), lambda b: (0, 0))],
        out_specs=(pl.BlockSpec((1, H, W, share, G), lambda b: (b, 0, 0, 0, 0)),
                   pl.BlockSpec((share, G), lambda b: (0, 0)),
                   pl.BlockSpec((share, G), lambda b: (0, 0))),
        scratch_shapes=[pltpu.VMEM((share, G), jnp.float32),
                        pltpu.VMEM((share, G), jnp.float32)],
        compiler_params=_mosaic_params("arbitrary"),
    )(x3p, w_bhwkg, gamma2.reshape(share, G), beta2.reshape(share, G))
    return y5.reshape(B * H * W, C), sc2.reshape(1, C), sh2.reshape(1, C)


# --------------------------------------------------------------------------
# Full Bottleneck forward
# --------------------------------------------------------------------------
def bottleneck_forward(x_nchw, params, kernel_size, share_planes):
    B, Cin, H, W = x_nchw.shape
    k = kernel_size
    kk = k * k
    p = k // 2
    x = jnp.transpose(x_nchw, (0, 2, 3, 1)).astype(jnp.float32)     # NHWC
    N = B * H * W
    x_nc = x.reshape(N, Cin)
    identity = x_nc

    rel = params["W1"].shape[1]
    mid = params["W3"].shape[1]
    G = mid // share_planes

    # --- hoisted bf16 weight casts + trace-time weight/param permutations ---
    W1 = params["W1"].astype(jnp.bfloat16)
    W2 = params["W2"].astype(jnp.bfloat16)
    W3 = params["W3"].astype(jnp.bfloat16)
    Wf = params["Wf"].astype(jnp.bfloat16)

    Wc1 = params["Wc1"]
    Wc1_a = Wc1[:rel].astype(jnp.bfloat16)                                     # (rel, G)
    Wc1_b = jnp.transpose(Wc1[rel:].reshape(rel, kk, G),
                          (1, 0, 2)).astype(jnp.bfloat16)                      # (kk, rel, G)

    # conv_w second conv: columns permuted to kpos-major (kpos*G + g)
    Wc2 = params["Wc2"]
    Wc2p = jnp.transpose(Wc2.reshape(G, G, kk), (0, 2, 1)).reshape(G, kk * G)
    Wc2p = Wc2p.astype(jnp.bfloat16)
    bc2p = jnp.transpose(params["bc2"].reshape(G, kk), (1, 0)).reshape(kk * G)

    # conv_w first BN params: split into the x1 part and kpos-major unfold part
    ga, ba = params["ga"], params["ba"]
    ga1, ba1 = ga[:rel], ba[:rel]
    ga2 = jnp.transpose(ga[rel:].reshape(rel, kk), (1, 0))                      # (kk, rel)
    ba2 = jnp.transpose(ba[rel:].reshape(rel, kk), (1, 0))

    # --- bn1 batch statistics on the raw input ---
    scale1, shift1 = bn_scale_shift(x_nc, params["g1"], params["be1"])

    # --- relu(bn1(x)) -> conv1/conv2/conv3 (x1 stats fused into epilogue) ---
    x1, x2, x3, sca1, sha1 = bn_relu_split3(
        x_nc, scale1, shift1, W1, params["b1"], W2, params["b2"],
        W3, params["b3"], ga1, ba1)

    # --- reflection-pad x2; unfolded-channel BN stats via in-kernel unfold ---
    x2p = jnp.pad(x2.reshape(B, H, W, rel),
                  ((0, 0), (p, p), (p, p), (0, 0)), mode="reflect")
    sca2, sha2 = unfold_bn_stats(x2p, ga2, ba2, H, W, k)

    # --- conv_w stage 1: in-kernel unfold, x2u never materialized; h-stats fused ---
    h, scb, shb = sam_conv_w_stage1(x1, x2p, sca1, sha1, sca2, sha2,
                                    Wc1_a, Wc1_b, params["gb"], params["bb"], H, W, k)

    # --- conv_w stage 2: relu(BN(h)) @ Wc2 (kpos-major -> no post-hoc transpose) ---
    wlin = fused_matmul(h, scb, shb, Wc2p, bc2p)
    w_bhwkg = wlin.reshape(B, H, W, kk, G)                          # free reshape

    # --- local aggregation (zero-pad, in-kernel unfold) + fused bn2 stats ---
    y_flat, scale2, shift2 = sam_aggregate_bn2(
        x3.reshape(B, H, W, mid), w_bhwkg, params["g2"], params["be2"],
        share_planes, k)

    # --- relu(bn2(y)) -> final 1x1 conv -> += identity ---
    out = fused_matmul(y_flat, scale2, shift2, Wf, params["bf"], residual=identity)

    return jnp.transpose(out.reshape(B, H, W, -1), (0, 3, 1, 2))     # back to NCHW


# --------------------------------------------------------------------------
# Deterministic parameter initialization (shapes from Bottleneck.__init__)
# --------------------------------------------------------------------------
def init_params(key, in_planes, rel_planes, mid_planes, out_planes,
                share_planes, kernel_size):
    kk = kernel_size * kernel_size
    G = mid_planes // share_planes

    def conv_w(key, cin, cout):
        return jax.random.normal(key, (cin, cout), jnp.float32) / math.sqrt(cin)

    def bias(key, c):
        return jax.random.normal(key, (c,), jnp.float32) * 0.1

    def bn(key, c):
        k1, k2 = jax.random.split(key)
        return (1.0 + 0.1 * jax.random.normal(k1, (c,), jnp.float32),
                0.1 * jax.random.normal(k2, (c,), jnp.float32))

    keys = jax.random.split(key, 16)
    g1, be1 = bn(keys[0], in_planes)
    ga, ba = bn(keys[1], rel_planes * (kk + 1))
    gb, bb = bn(keys[2], G)
    g2, be2 = bn(keys[3], mid_planes)
    return dict(
        g1=g1, be1=be1, g2=g2, be2=be2, ga=ga, ba=ba, gb=gb, bb=bb,
        W1=conv_w(keys[4], in_planes, rel_planes), b1=bias(keys[5], rel_planes),
        W2=conv_w(keys[6], in_planes, rel_planes), b2=bias(keys[7], rel_planes),
        W3=conv_w(keys[8], in_planes, mid_planes), b3=bias(keys[9], mid_planes),
        Wc1=conv_w(keys[10], rel_planes * (kk + 1), G),            # bias=False
        Wc2=conv_w(keys[11], G, kk * G), bc2=bias(keys[12], kk * G),
        Wf=conv_w(keys[13], mid_planes, out_planes), bf=bias(keys[14], out_planes),
    )


# --------------------------------------------------------------------------
if __name__ == "__main__":
    key = jax.random.PRNGKey(0)
    kp, kx = jax.random.split(key)

    # small, module-consistent shapes (out_planes == in_planes for the residual add)
    B, H, W = 2, 8, 8
    in_planes, rel_planes, mid_planes, out_planes = 16, 4, 16, 16
    share_planes, kernel_size, stride = 4, 3, 1

    params = init_params(kp, in_planes, rel_planes, mid_planes, out_planes,
                         share_planes, kernel_size)
    x = jax.random.normal(kx, (B, in_planes, H, W), jnp.float32)

    fwd = functools.partial(bottleneck_forward, kernel_size=kernel_size,
                            share_planes=share_planes)
    out = fwd(x, params)
    out = jax.block_until_ready(out)

    assert out.shape == (B, out_planes, H, W)
    assert bool(jnp.all(jnp.isfinite(out)))
    print("KERNEL_OK")
</pallas_src>

<mosaic_0001>
module attributes {stable_mosaic.version = 11 : i64} {
  func.func @bn_stats_kernel(%arg0: i32, %arg1: memref<128x16xf32, #tpu.memory_space<vmem>>, %arg2: memref<1x16xf32, #tpu.memory_space<vmem>>, %arg3: memref<1x16xf32, #tpu.memory_space<vmem>>, %arg4: memref<1x16xf32, #tpu.memory_space<vmem>>, %arg5: memref<1x16xf32, #tpu.memory_space<vmem>>, %arg6: memref<1x16xf32, #tpu.memory_space<vmem>>, %arg7: memref<1x16xf32, #tpu.memory_space<vmem>>) attributes {dimension_semantics = [#tpu.dimension_semantics<arbitrary>], iteration_bounds = array<i64: 1>, scalar_prefetch = 0 : i64, scratch_operands = 2 : i64, tpu.core_type = #tpu.core_type<tc>, window_params = [{transform_indices = @transform_0, window_bounds = array<i64: 128, 16>}, {pipeline_mode = #tpu.pipeline_mode<synchronous>, transform_indices = @transform_1, window_bounds = array<i64: 1, 16>}, {pipeline_mode = #tpu.pipeline_mode<synchronous>, transform_indices = @transform_2, window_bounds = array<i64: 1, 16>}, {pipeline_mode = #tpu.pipeline_mode<synchronous>, transform_indices = @transform_3, window_bounds = array<i64: 1, 16>}, {pipeline_mode = #tpu.pipeline_mode<synchronous>, transform_indices = @transform_4, window_bounds = array<i64: 1, 16>}]} {
    %c0_i32 = arith.constant 0 : i32
    %0 = arith.cmpi eq, %arg0, %c0_i32 : i32
    %1 = arith.extui %0 : i1 to i32
    %c0_i32_0 = arith.constant 0 : i32
    %2 = arith.cmpi ne, %1, %c0_i32_0 : i32
    scf.if %2 {
      %cst_15 = arith.constant 0.000000e+00 : f32
      %26 = vector.broadcast %cst_15 : f32 to vector<1x16xf32>
      %c0_16 = arith.constant 0 : index
      %c0_17 = arith.constant 0 : index
      %27 = vector.load %arg6[%c0_16, %c0_17] : memref<1x16xf32, #tpu.memory_space<vmem>>, vector<1x16xf32>
      tpu.vector_store %arg6[%c0_16, %c0_17], %26 {strides = array<i32>} : memref<1x16xf32, #tpu.memory_space<vmem>>, vector<1x16xf32>,
      %cst_18 = arith.constant 0.000000e+00 : f32
      %28 = vector.broadcast %cst_18 : f32 to vector<1x16xf32>
      %c0_19 = arith.constant 0 : index
      %c0_20 = arith.constant 0 : index
      %29 = vector.load %arg7[%c0_19, %c0_20] : memref<1x16xf32, #tpu.memory_space<vmem>>, vector<1x16xf32>
      tpu.vector_store %arg7[%c0_19, %c0_20], %28 {strides = array<i32>} : memref<1x16xf32, #tpu.memory_space<vmem>>, vector<1x16xf32>,
    } else {
    }
    %c0 = arith.constant 0 : index
    %c0_1 = arith.constant 0 : index
    %3 = vector.load %arg1[%c0, %c0_1] : memref<128x16xf32, #tpu.memory_space<vmem>>, vector<128x16xf32>
    %4 = tpu.iota {dimensions = array<i32: 0>} : vector<128x16xi32>
    %c128_i32 = arith.constant 128 : i32
    %5 = arith.muli %arg0, %c128_i32 : i32
    %6 = vector.broadcast %5 : i32 to vector<128x16xi32>
    %7 = arith.addi %4, %6 : vector<128x16xi32>
    %c128_i32_2 = arith.constant 128 : i32
    %8 = vector.broadcast %c128_i32_2 : i32 to vector<128x16xi32>
    %9 = arith.cmpi slt, %7, %8 : vector<128x16xi32>
    %cst = arith.constant 0.000000e+00 : f32
    %10 = vector.broadcast %cst : f32 to vector<128x16xf32>
    %11 = arith.select %9, %3, %10 : vector<128x16xi1>, vector<128x16xf32>
    %c0_3 = arith.constant 0 : index
    %c0_4 = arith.constant 0 : index
    %12 = vector.load %arg6[%c0_3, %c0_4] : memref<1x16xf32, #tpu.memory_space<vmem>>, vector<1x16xf32>
    %cst_5 = arith.constant dense<0.000000e+00> : vector<16xf32>
    %13 = vector.multi_reduction <add>, %11, %cst_5 [0] : vector<128x16xf32> to vector<16xf32>
    %14 = vector.shape_cast %13 : vector<16xf32> to vector<1x16xf32>
    %15 = arith.addf %12, %14 : vector<1x16xf32>
    %c0_6 = arith.constant 0 : index
    %c0_7 = arith.constant 0 : index
    %16 = vector.load %arg6[%c0_6, %c0_7] : memref<1x16xf32, #tpu.memory_space<vmem>>, vector<1x16xf32>
    tpu.vector_store %arg6[%c0_6, %c0_7], %15 {strides = array<i32>} : memref<1x16xf32, #tpu.memory_space<vmem>>, vector<1x16xf32>,
    %c0_8 = arith.constant 0 : index
    %c0_9 = arith.constant 0 : index
    %17 = vector.load %arg7[%c0_8, %c0_9] : memref<1x16xf32, #tpu.memory_space<vmem>>, vector<1x16xf32>
    %18 = arith.mulf %11, %11 : vector<128x16xf32>
    %cst_10 = arith.constant dense<0.000000e+00> : vector<16xf32>
    %19 = vector.multi_reduction <add>, %18, %cst_10 [0] : vector<128x16xf32> to vector<16xf32>
    %20 = vector.shape_cast %19 : vector<16xf32> to vector<1x16xf32>
    %21 = arith.addf %17, %20 : vector<1x16xf32>
    %c0_11 = arith.constant 0 : index
    %c0_12 = arith.constant 0 : index
    %22 = vector.load %arg7[%c0_11, %c0_12] : memref<1x16xf32, #tpu.memory_space<vmem>>, vector<1x16xf32>
    tpu.vector_store %arg7[%c0_11, %c0_12], %21 {strides = array<i32>} : memref<1x16xf32, #tpu.memory_space<vmem>>, vector<1x16xf32>,
    %c0_i32_13 = arith.constant 0 : i32
    %23 = arith.cmpi eq, %arg0, %c0_i32_13 : i32
    %24 = arith.extui %23 : i1 to i32
    %c0_i32_14 = arith.constant 0 : i32
    %25 = arith.cmpi ne, %24, %c0_i32_14 : i32
    scf.if %25 {
      %c0_15 = arith.constant 0 : index
      %c0_16 = arith.constant 0 : index
      %26 = vector.load %arg6[%c0_15, %c0_16] : memref<1x16xf32, #tpu.memory_space<vmem>>, vector<1x16xf32>
      %cst_17 = arith.constant 7.812500e-03 : f32
      %27 = vector.broadcast %cst_17 : f32 to vector<1x16xf32>
      %28 = arith.mulf %26, %27 : vector<1x16xf32>
      %c0_18 = arith.constant 0 : index
      %c0_19 = arith.constant 0 : index
      %29 = vector.load %arg7[%c0_18, %c0_19] : memref<1x16xf32, #tpu.memory_space<vmem>>, vector<1x16xf32>
      %cst_20 = arith.constant 7.812500e-03 : f32
      %30 = vector.broadcast %cst_20 : f32 to vector<1x16xf32>
      %31 = arith.mulf %29, %30 : vector<1x16xf32>
      %32 = arith.mulf %28, %28 : vector<1x16xf32>
      %33 = arith.subf %31, %32 : vector<1x16xf32>
      %cst_21 = arith.constant 0.000000e+00 : f32
      %34 = vector.broadcast %cst_21 : f32 to vector<1x16xf32>
      %35 = arith.maximumf %33, %34 : vector<1x16xf32>
      %c0_22 = arith.constant 0 : index
      %c0_23 = arith.constant 0 : index
      %36 = vector.load %arg2[%c0_22, %c0_23] : memref<1x16xf32, #tpu.memory_space<vmem>>, vector<1x16xf32>
      %cst_24 = arith.constant 9.99999974E-6 : f32
      %37 = vector.broadcast %cst_24 : f32 to vector<1x16xf32>
      %38 = arith.addf %35, %37 : vector<1x16xf32>
      %39 = math.rsqrt %38 : vector<1x16xf32>
      %40 = arith.mulf %36, %39 : vector<1x16xf32>
      %c0_25 = arith.constant 0 : index
      %c0_26 = arith.constant 0 : index
      %41 = vector.load %arg4[%c0_25, %c0_26] : memref<1x16xf32, #tpu.memory_space<vmem>>, vector<1x16xf32>
      tpu.vector_store %arg4[%c0_25, %c0_26], %40 {strides = array<i32>} : memref<1x16xf32, #tpu.memory_space<vmem>>, vector<1x16xf32>,
      %c0_27 = arith.constant 0 : index
      %c0_28 = arith.constant 0 : index
      %42 = vector.load %arg3[%c0_27, %c0_28] : memref<1x16xf32, #tpu.memory_space<vmem>>, vector<1x16xf32>
      %43 = arith.mulf %28, %40 : vector<1x16xf32>
      %44 = arith.subf %42, %43 : vector<1x16xf32>
      %c0_29 = arith.constant 0 : index
      %c0_30 = arith.constant 0 : index
      %45 = vector.load %arg5[%c0_29, %c0_30] : memref<1x16xf32, #tpu.memory_space<vmem>>, vector<1x16xf32>
      tpu.vector_store %arg5[%c0_29, %c0_30], %44 {strides = array<i32>} : memref<1x16xf32, #tpu.memory_space<vmem>>, vector<1x16xf32>,
    } else {
    }
    return
  }
  func.func @transform_0(%arg0: i32) -> (i32, i32) {
    %c0_i32 = arith.constant 0 : i32
    %c0_i32_0 = arith.constant 0 : i32
    return %arg0, %c0_i32 : i32, i32
  }
  func.func @transform_1(%arg0: i32) -> (i32, i32) {
    %c0_i32 = arith.constant 0 : i32
    %c0_i32_0 = arith.constant 0 : i32
    %c0_i32_1 = arith.constant 0 : i32
    return %c0_i32, %c0_i32_0 : i32, i32
  }
  func.func @transform_2(%arg0: i32) -> (i32, i32) {
    %c0_i32 = arith.constant 0 : i32
    %c0_i32_0 = arith.constant 0 : i32
    %c0_i32_1 = arith.constant 0 : i32
    return %c0_i32, %c0_i32_0 : i32, i32
  }
  func.func @transform_3(%arg0: i32) -> (i32, i32) {
    %c0_i32 = arith.constant 0 : i32
    %c0_i32_0 = arith.constant 0 : i32
    %c0_i32_1 = arith.constant 0 : i32
    return %c0_i32, %c0_i32_0 : i32, i32
  }
  func.func @transform_4(%arg0: i32) -> (i32, i32) {
    %c0_i32 = arith.constant 0 : i32
    %c0_i32_0 = arith.constant 0 : i32
    %c0_i32_1 = arith.constant 0 : i32
    return %c0_i32, %c0_i32_0 : i32, i32
  }
}

</mosaic_0001>

<bundles_post_ra>
// kernel: tpu_custom_call.1
= control target key start
LH: loop header
LB: loop body
LE: loop exit
PB: predicated region body
PF: predicated region fallthrough
CT: control target
= control target key end

     0   :  { %10 = vsyncpa [#allocation5], 0  ;;  %vm22_vm0 = vcmask 122880   ;;  %vm109_vm1 = vcmask 130048   ;;  %v306_v3 = vmov 0.0   ;;  %s450_s0 = inlined_call_operand.vmem [shape: f32[128,16], index: 0, kind: input, shape index: {}]   ;;  %s451_s1 = inlined_call_operand.vmem [shape: f32[1,16], index: 1, kind: input, shape index: {}]   ;;  %s452_s2 = inlined_call_operand.vmem [shape: f32[1,16], index: 2, kind: input, shape index: {}]   ;;  %s453_s3 = inlined_call_operand.hbm [shape: f32[1,16], index: 3, kind: output, shape index: {0}]   ;;  %s454_s4 = inlined_call_operand.hbm [shape: f32[1,16], index: 4, kind: output, shape index: {1}]  }
   0x1   :  { %v25_v0 = vld [vmem:[%s450_s0] sm:$0xff]  ;;  %v26_v1 = vld [vmem:[%s450_s0 + $0x8] sm:$0xff]  ;;  %v27_v2 = vld [vmem:[%s450_s0 + $0x10] sm:$0xff]  ;;  %23 = vst.msk [vmem:[#allocation2] sm:$0x1] %vm22_vm0, %v306_v3 }
   0x2   :  { %24 = vst.msk [vmem:[#allocation3] sm:$0x1] %vm22_vm0, %v306_v3  ;;  %v28_v4 = vld [vmem:[%s450_s0 + $0x18] sm:$0xff]  ;;  %v110_v5 = vsel %vm109_vm1, %v25_v0, 0.0  ;;  %v111_v6 = vsel %vm109_vm1, %v26_v1, 0.0  ;;  %v113_v7 = vsel %vm109_vm1, %v27_v2, 0.0  ;;  %v151_v16 = vmul.f32 %v25_v0, %v25_v0 }
   0x3   :  { %v29_v8 = vld [vmem:[%s450_s0 + $0x20] sm:$0xff]  ;;  %v112_v9 = vadd.f32 %v111_v6, %v110_v5  ;;  %v115_v10 = vsel %vm109_vm1, %v28_v4, 0.0  ;;  %v30_v11 = vld [vmem:[%s450_s0 + $0x28] sm:$0xff]  ;;  %v31_v14 = vld [vmem:[%s450_s0 + $0x30] sm:$0xff]  ;;  %v152_v17 = vmul.f32 %v26_v1, %v26_v1  ;;  %v153_v18 = vmul.f32 %v27_v2, %v27_v2 }
   0x4   :  { %v117_v13 = vsel %vm109_vm1, %v29_v8, 0.0 }
   0x5   :  { %v114_v12 = vadd.f32 %v113_v7, %v112_v9 }
   0x7   :  { %v116_v15 = vadd.f32 %v115_v10, %v114_v12 }
   0x8   :  { %11 = vsyncpa [#allocation7], 0  ;;  %v119_v19 = vsel %vm109_vm1, %v30_v11, 0.0  ;;  %v32_v20 = vld [vmem:[%s450_s0 + $0x38] sm:$0xff]  ;;  %v154_v22 = vmul.f32 %v28_v4, %v28_v4  ;;  %v121_v23 = vsel %vm109_vm1, %v31_v14, 0.0  ;;  %v155_v24 = vmul.f32 %v29_v8, %v29_v8  ;;  %v33_v25 = vld [vmem:[%s450_s0 + $0x40] sm:$0xff] }
   0x9   :  { %v118_v21 = vadd.f32 %v117_v13, %v116_v15  ;;  %v167_v27 = vsel %vm109_vm1, %v151_v16, 0.0  ;;  %v168_v28 = vsel %vm109_vm1, %v152_v17, 0.0  ;;  %v170_v29 = vsel %vm109_vm1, %v153_v18, 0.0  ;;  %v34_v32 = vld [vmem:[%s450_s0 + $0x48] sm:$0xff]  ;;  %v35_v38 = vld [vmem:[%s450_s0 + $0x50] sm:$0xff]  ;;  %v36_v44 = vld [vmem:[%s450_s0 + $0x58] sm:$0xff] }
   0xa   :  { %v123_v30 = vsel %vm109_vm1, %v32_v20, 0.0  ;;  %v169_v31 = vadd.f32 %v168_v28, %v167_v27  ;;  %v156_v34 = vmul.f32 %v30_v11, %v30_v11  ;;  %v172_v35 = vsel %vm109_vm1, %v154_v22, 0.0  ;;  %v37_v50 = vld [vmem:[%s450_s0 + $0x60] sm:$0xff]  ;;  %v38_v56 = vld [vmem:[%s450_s0 + $0x68] sm:$0xff]  ;;  %v39_v62 = vld [vmem:[%s450_s0 + $0x70] sm:$0xff]  ;;  %s307_s22 = smov [#allocation4]  }
   0xb   :  { %v120_v26 = vadd.f32 %v119_v19, %v118_v21  ;;  %v125_v36 = vsel %vm109_vm1, %v33_v25, 0.0  ;;  %v157_v40 = vmul.f32 %v31_v14, %v31_v14  ;;  %v174_v41 = vsel %vm109_vm1, %v155_v24, 0.0  ;;  %v40_v4 = vld [vmem:[%s450_s0 + $0x78] sm:$0xff]  ;;  %s231_s23 = sshll.u32 %s307_s22, 4  ;;  %s308_s26 = smov [#allocation6]   ;;  %s232_s23 = int_to_ptr.vmem [resolvable:$true] %s231_s23 }
   0xc   :  { %v171_v37 = vadd.f32 %v170_v29, %v169_v31  ;;  %v127_v42 = vsel %vm109_vm1, %v34_v32, 0.0  ;;  %v158_v46 = vmul.f32 %v32_v20, %v32_v20  ;;  %v176_v47 = vsel %vm109_vm1, %v156_v34, 0.0  ;;  %s241_s27 = sshll.u32 %s308_s26, 4  ;;  %s258_s28 = scalar_lea.vmem %s232_s23, 16  ;;  %s242_s27 = int_to_ptr.vmem [resolvable:$true] %s241_s27 }
   0xd   :  { %v122_v33 = vadd.f32 %v121_v23, %v120_v26  ;;  %v129_v48 = vsel %vm109_vm1, %v35_v38, 0.0  ;;  %v159_v52 = vmul.f32 %v33_v25, %v33_v25  ;;  %v178_v53 = vsel %vm109_vm1, %v157_v40, 0.0  ;;  %p259_p0 = scmp.ne.s32.totalorder %s232_s23, %s258_s28  ;;  %s262_s29 = scalar_lea.vmem %s232_s23, 32 }
   0xe   :  { %v173_v43 = vadd.f32 %v172_v35, %v171_v37  ;;  %v131_v54 = vsel %vm109_vm1, %v36_v44, 0.0  ;;  %v160_v58 = vmul.f32 %v34_v32, %v34_v32  ;;  %v180_v59 = vsel %vm109_vm1, %v158_v46, 0.0  ;;  %p263_p1 = scmp.lt.s32.totalorder %s232_s23, %s232_s23  ;;  %p264_p2 = scmp.lt.s32.totalorder %s262_s29, %s258_s28 }
   0xf   :  { %v124_v39 = vadd.f32 %v123_v30, %v122_v33  ;;  %v133_v60 = vsel %vm109_vm1, %v37_v50, 0.0  ;;  %v161_v0 = vmul.f32 %v35_v38, %v35_v38  ;;  %v182_v1 = vsel %vm109_vm1, %v159_v52, 0.0 }
  0x10   :  { %v175_v49 = vadd.f32 %v174_v41, %v173_v43  ;;  %v135_v2 = vsel %vm109_vm1, %v38_v56, 0.0  ;;  %v162_v6 = vmul.f32 %v36_v44, %v36_v44  ;;  %v184_v7 = vsel %vm109_vm1, %v160_v58, 0.0  ;;  %v150_v44 = vld [vmem:[#allocation3] sm:$0x1]  ;;  %v221_v58 = vld [vmem:[%s452_s2] sm:$0x1]  ;;  %p265_p3 = por %p264_p2, %p263_p1 }
  0x11   :  { %v126_v45 = vadd.f32 %v125_v36, %v124_v39  ;;  %v137_v8 = vsel %vm109_vm1, %v39_v62, 0.0  ;;  %v163_v11 = vmul.f32 %v37_v50, %v37_v50  ;;  %v186_v12 = vsel %vm109_vm1, %v161_v0, 0.0  ;;  %v108_v36 = vld [vmem:[#allocation2] sm:$0x1] }
  0x12   :  { %v177_v55 = vadd.f32 %v176_v47, %v175_v49  ;;  %v139_v13 = vsel %vm109_vm1, %v40_v4, 0.0  ;;  %v164_v16 = vmul.f32 %v38_v56, %v38_v56  ;;  %v188_v17 = vsel %vm109_vm1, %v162_v6, 0.0  ;;  %p266_p4 = pnand %p265_p3, %p259_p0 }
  0x13   :  { %v128_v51 = vadd.f32 %v127_v42, %v126_v45  ;;  %v165_v20 = vmul.f32 %v39_v62, %v39_v62  ;;  %v190_v21 = vsel %vm109_vm1, %v163_v11, 0.0  ;;  %v166_v24 = vmul.f32 %v40_v4, %v40_v4 }
  0x14   :  { %v179_v61 = vadd.f32 %v178_v53, %v177_v55  ;;  %v192_v25 = vsel %vm109_vm1, %v164_v16, 0.0  ;;  %v216_v55 = vld [vmem:[%s451_s1] sm:$0x1] }
  0x15   :  { %v130_v57 = vadd.f32 %v129_v48, %v128_v51  ;;  %v194_v28 = vsel %vm109_vm1, %v165_v20, 0.0  ;;  %v196_v31 = vsel %vm109_vm1, %v166_v24, 0.0 }
  0x16   :  { %v181_v3 = vadd.f32 %v180_v59, %v179_v61 }
  0x17   :  { %v132_v63 = vadd.f32 %v131_v54, %v130_v57 }
  0x18   :  { %v183_v9 = vadd.f32 %v182_v1, %v181_v3 }
  0x19   :  { %v134_v5 = vadd.f32 %v133_v60, %v132_v63 }
  0x1a   :  { %v185_v14 = vadd.f32 %v184_v7, %v183_v9 }
  0x1b   :  { %v136_v10 = vadd.f32 %v135_v2, %v134_v5 }
  0x1c   :  { %v187_v18 = vadd.f32 %v186_v12, %v185_v14 }
  0x1d   :  { %v138_v15 = vadd.f32 %v137_v8, %v136_v10 }
  0x1e   :  { %v189_v22 = vadd.f32 %v188_v17, %v187_v18 }
  0x1f   :  { %v140_v19 = vadd.f32 %v139_v13, %v138_v15 }
  0x20   :  { %v191_v26 = vadd.f32 %v190_v21, %v189_v22 }
  0x21   :  { %v141_v23 = vrot.slane %v140_v19, 4 }
  0x22   :  { %v193_v29 = vadd.f32 %v192_v25, %v191_v26 }
  0x23   :  { %v142_v27 = vadd.f32 %v141_v23, %v140_v19 }
  0x24   :  { %v195_v32 = vadd.f32 %v194_v28, %v193_v29 }
  0x25   :  { %v143_v30 = vrot.slane %v142_v27, 2 }
  0x26   :  { %v197_v34 = vadd.f32 %v196_v31, %v195_v32 }
  0x27   :  { %v144_v33 = vadd.f32 %v143_v30, %v142_v27 }
  0x28   :  { %v198_v37 = vrot.slane %v197_v34, 4 }
  0x29   :  { %v145_v35 = vrot.slane %v144_v33, 1 }
  0x2a   :  { %v199_v39 = vadd.f32 %v198_v37, %v197_v34 }
  0x2b   :  { %v146_v38 = vadd.f32 %v145_v35, %v144_v33 }
  0x2c   :  { %v200_v41 = vrot.slane %v199_v39, 2 }
  0x2d   :  { %v147_v40 = vadd.f32 %v146_v38, %v108_v36 }
  0x2e   :  { %v201_v42 = vadd.f32 %v200_v41, %v199_v39 }
  0x2f   :  { %149 = vst.msk [vmem:[#allocation2] sm:$0x1] %vm22_vm0, %v147_v40 }
  0x30   :  { %v202_v43 = vrot.slane %v201_v42, 1 }
  0x32   :  { %v203_v45 = vadd.f32 %v202_v43, %v201_v42 }
  0x34   :  { %v204_v46 = vadd.f32 %v203_v45, %v150_v44 }
  0x36   :  { %v209_v47 = vld [vmem:[#allocation2] sm:$0x1]  ;;  %205 = vst.msk [vmem:[#allocation3] sm:$0x1] %vm22_vm0, %v204_v46 }
  0x37   :  { %v210_v48 = vmul.f32 0.0078125, %v209_v47 }
  0x39   :  { %v213_v49 = vmul.f32 %v210_v48, %v210_v48 }
  0x3d   :  { %v211_v50 = vld [vmem:[#allocation3] sm:$0x1] }
  0x3e   :  { %v212_v51 = vmul.f32 0.0078125, %v211_v50 }
  0x40   :  { %v214_v52 = vsub.f32 %v212_v51, %v213_v49 }
  0x42   :  { %v215_v53 = vmax.f32 %v214_v52, 0.0 }
  0x44   :  { %v217_v54 = vadd.f32 1e-05, %v215_v53 }
  0x46   :  { %256 = vrsqrt.f32 %v217_v54 }
  0x50   :  { %v257_v56 = vpop.eup %256 }
  0x51   :  { %v219_v57 = vmul.f32 %v257_v56, %v216_v55 }
  0x53   :  { %220 = vst.msk [vmem:[#allocation4] sm:$0x1] %vm22_vm0, %v219_v57  ;;  %v222_v59 = vmul.f32 %v219_v57, %v210_v48 }
  0x54   :  { %269 = shalt.err (!%p266_p4)
}
  0x55   :  { %s270_s5 = scalar_lea.hbm %s453_s3, 16 }
  0x56   :  { %p271_p5 = scmp.ne.s32.totalorder %s453_s3, %s270_s5  ;;  %p274_p6 = scmp.lt.u32.totalorder %s270_s5, %s453_s3 }
  0x58   :  { %p276_p7 = pnand %p274_p6, %p271_p5 }
  0x5a   :  { %279 = shalt.err (!%p276_p7)
}
  0x5b   :  { %234 = dma.vmem_to_hbm [thread:$0]  %s232_s23, 16, %s453_s3, [#allocation5]   ;;  %v223_v60 = vsub.f32 %v221_v58, %v222_v59 }
  0x5c   :  { %s280_s11 = scalar_lea.vmem %s242_s27, 16  ;;  %s284_s12 = scalar_lea.vmem %s242_s27, 32 }
  0x5d   :  { %224 = vst.msk [vmem:[#allocation6] sm:$0x1] %vm22_vm0, %v223_v60  ;;  %p281_p8 = scmp.ne.s32.totalorder %s242_s27, %s280_s11  ;;  %p285_p9 = scmp.lt.s32.totalorder %s242_s27, %s242_s27 }
  0x5e   :  { %p286_p10 = scmp.lt.s32.totalorder %s284_s12, %s280_s11 }
  0x60   :  { %p287_p11 = por %p286_p10, %p285_p9 }
  0x62   :  { %p288_p12 = pnand %p287_p11, %p281_p8 }
  0x64   :  { %291 = shalt.err (!%p288_p12)
}
  0x65   :  { %s292_s15 = scalar_lea.hbm %s454_s4, 16 }
  0x66   :  { %p293_p13 = scmp.ne.s32.totalorder %s454_s4, %s292_s15  ;;  %p296_p0 = scmp.lt.u32.totalorder %s292_s15, %s454_s4 }
  0x68   :  { %p298_p1 = pnand %p296_p0, %p293_p13 }
  0x6a   :  { %301 = shalt.err (!%p298_p1)
}
  0x6b   :  { %244 = dma.vmem_to_hbm [thread:$0]  %s242_s27, 16, %s454_s4, [#allocation7]  }
  0x6c   :  { %302 = dma.done.wait [#allocation5], 16  }
  0x6d   :  { %303 = vsyncadd [#allocation5], 4294967280 }
  0x6e   :  { %304 = dma.done.wait [#allocation7], 16  }
  0x6f   :  { %305 = vsyncadd [#allocation7], 4294967280 }
  0x70   :  { %251 = vsyncpa [#allocation5], 1 }
  0x71   :  { %252 = vsyncpa [#allocation7], 1 }

</bundles_post_ra>
